<compile_context>
chip_gen: v7x
topology: tpu7x:2x2x1
jax: 0.10.0
libtpu: 0.0.40
codegen_flags: <defaults>
</compile_context>

<pallas_src>
import jax
import jax.numpy as jnp
from jax.experimental import pallas as pl
from jax.experimental.pallas import tpu as pltpu


def _conv1x1_silu_kernel(x_ref, w_ref, b_ref, o_ref):
    # x_ref: (1, C, tk)   activation tile in native NCHW layout (f32)
    # w_ref: (tn, C)      1x1-conv weight tile
    # b_ref: (tn, 1)      bias tile
    # o_ref: (1, tn, tk)  conv output tile (NCHW layout, bf16 store)
    x = x_ref[0]                                           # (C, tk)
    acc = jnp.dot(w_ref[...].astype(jnp.float32),
                  x.astype(jnp.float32),
                  preferred_element_type=jnp.float32)      # (tn, tk), f32 acc on MXU
    acc = acc + b_ref[...].astype(jnp.float32)             # bias-add in f32
    # SiLU: keep both exp and the divide on the EUP slot (VALU stays free).
    acc = acc * pl.reciprocal(1.0 + jnp.exp(-acc), approx=True)
    o_ref[0] = acc.astype(o_ref.dtype)


def conv1x1_silu_nchw(x3, w2d, b2d, *, out_dtype, tk_target=2048):
    """Fused y[b, n, s] = SiLU(sum_c w2d[n, c] * x3[b, c, s] + b2d[n, 0]).

    x3  : [B, C, S]  activations in native NCHW layout (S = H*W)
    w2d : [N, C]     1x1-conv weight
    b2d : [N, 1]     bias
    Returns [B, N, S] in `out_dtype` (lane-dense stores: last dim is spatial).
    """
    B, C, S = x3.shape
    N = w2d.shape[0]

    # Cout tile: keep tn | N so the grid divides exactly.  (On v5e a 128-wide
    # tile matches the 4x128x128 MXU; 256 is native on v6e/v7x.)
    if N > 512 and N % 256 == 0:
        tn = 256
    elif N > 512 and N % 128 == 0:
        tn = 128
    else:
        tn = N

    in_is = x3.dtype.itemsize
    out_is = jnp.dtype(out_dtype).itemsize

    # Generation-aware VMEM budget: v7x has 64 MiB/TC, v5e/v6e 128 MiB.  Keep the
    # double-buffered tiles under ~1/2 of physical VMEM, leaving headroom for
    # compiler scratch / relayout temporaries.
    try:
        vmem_cap = int(pltpu.get_tpu_info().vmem_capacity_bytes)
    except Exception:
        vmem_cap = 64 << 20
    tile_budget = max(8 << 20, vmem_cap // 2 - (10 << 20))

    def tiles_bytes(tk_):
        return (2 * tk_ * (C * in_is + tn * out_is)    # double-buffered x / out tiles
                + 2 * (tn * C * in_is + tn * 4)        # weight + bias buffers
                + tn * tk_ * 4)                        # f32 accumulator value

    tk = tk_target
    while tk > 256 and tiles_bytes(tk) > tile_budget:
        tk //= 2

    # Spatial tile: full extent when it fits (lane-dense even if not a multiple
    # of 128), else a 128-aligned tile with a cdiv grid.  No jnp.pad of x: Pallas
    # masks the partial trailing block, and every output column depends only on
    # its own input column, so stale columns in the edge block are never written.
    if S <= tk:
        tk = S
        grid_m = 1
    else:
        grid_m = pl.cdiv(S, tk)

    vmem_limit = int(min(vmem_cap - (12 << 20), tiles_bytes(tk) + (16 << 20)))
    vmem_limit = max(vmem_limit, 16 << 20)

    # Grid: n outer / spatial inner so the (tn, C) weight and bias tiles stay
    # resident across the spatial sweep (their block index is constant in m).
    # NOTE: weight/bias could be single-buffered (pipeline_mode=pl.Buffered(1))
    # to reclaim VMEM, but Pallas already skips the re-DMA when the block index
    # repeats and the buffers are tiny, so the extra knob is not worth the risk.
    return pl.pallas_call(
        _conv1x1_silu_kernel,
        out_shape=jax.ShapeDtypeStruct((B, N, S), out_dtype),
        grid_spec=pltpu.PrefetchScalarGridSpec(
            num_scalar_prefetch=0,
            grid=(B, N // tn, grid_m),
            in_specs=[
                pl.BlockSpec((1, C, tk), lambda b, n, m: (b, 0, m)),
                pl.BlockSpec((tn, C), lambda b, n, m: (n, 0)),
                pl.BlockSpec((tn, 1), lambda b, n, m: (n, 0)),
            ],
            out_specs=pl.BlockSpec((1, tn, tk), lambda b, n, m: (b, n, m)),
        ),
        compiler_params=pltpu.CompilerParams(
            dimension_semantics=("parallel", "parallel", "parallel"),
            vmem_limit_bytes=vmem_limit,
        ),
    )(x3, w2d, b2d)


def make_upsample_params(key, dim, dim_out=None, factor=2, dtype=jnp.float32):
    """Replicates Upsample.__init__ weight construction (deterministically).

    conv weight shape: [dim_out * factor^2, dim, 1, 1], built by kaiming-uniform
    init of a [dim_out, dim, 1, 1] tensor repeated factor^2 times along the
    output-channel axis ('o ... -> (o r) ...'); bias is zeros.
    """
    dim_out = dim if dim_out is None else dim_out
    r2 = factor * factor
    fan_in = dim * 1 * 1
    bound = jnp.sqrt(6.0 / fan_in)   # kaiming_uniform_: gain*sqrt(3/fan_in), gain=sqrt(2)
    base = jax.random.uniform(key, (dim_out, dim, 1, 1), dtype=dtype,
                              minval=-bound, maxval=bound)
    weight = jnp.repeat(base, r2, axis=0)           # [dim_out*r2, dim, 1, 1]
    bias = jnp.zeros((dim_out * r2,), dtype=dtype)
    return weight, bias


def upsample_forward(x, weight, bias, factor, *, compute_dtype=jnp.bfloat16):
    """x: [B, C, H, W] (NCHW)  ->  [B, C_out, factor*H, factor*W] (NCHW)."""
    B, C, H, W = x.shape
    r = factor
    N = weight.shape[0]            # Cout * r^2
    Cout = N // (r * r)

    # Native-layout views: no HBM copy, no transpose pass before the kernel.
    x3 = x.reshape(B, C, H * W)                    # [B, C, S] contiguous view
    w2d = weight.reshape(N, C)                     # 1x1 conv -> [N, C]
    b2d = bias.reshape(N, 1)

    # Fused conv + bias + SiLU; output stays in NCHW layout, bf16 store.
    y = conv1x1_silu_nchw(x3, w2d, b2d, out_dtype=compute_dtype)   # [B, N, H*W]

    # PixelShuffle + cast back to x.dtype in ONE fused transpose pass:
    # [B, Cout, r, r, H, W] -> (0,1,4,2,5,3) -> [B, Cout, H*r, W*r].
    # TODO(synk): folding this shuffle into the kernel's out_specs index_map (or
    # keeping the surrounding model channels-last) would remove this remaining
    # HBM pass over the 4x-sized output.
    # TODO(synk): if the weights are guaranteed to stay r^2-replicated (true at
    # init, NOT after training), the conv could compute only Cout channels and
    # broadcast spatially here -- gated off to preserve general semantics.
    y = y.reshape(B, Cout, r, r, H, W).transpose(0, 1, 4, 2, 5, 3)
    y = y.reshape(B, Cout, H * r, W * r).astype(x.dtype)
    return y


if __name__ == "__main__":
    key = jax.random.PRNGKey(0)
    k_x, k_w = jax.random.split(key)

    B, C, H, W = 2, 4, 16, 16
    factor = 2
    x = jax.random.normal(k_x, (B, C, H, W), dtype=jnp.float32)
    weight, bias = make_upsample_params(k_w, dim=C, dim_out=None, factor=factor)

    fwd = jax.jit(upsample_forward, static_argnums=(3,))
    out = jax.block_until_ready(fwd(x, weight, bias, factor))
    assert out.shape == (B, C, factor * H, factor * W), out.shape

    # Reference (pure JAX, f32): 1x1 conv + SiLU + pixel-shuffle.
    ref = jnp.einsum('bchw,oc->bohw', x, weight.reshape(-1, C)) + bias[None, :, None, None]
    ref = ref * jax.nn.sigmoid(ref)
    ref = ref.reshape(B, C, factor, factor, H, W).transpose(0, 1, 4, 2, 5, 3)
    ref = ref.reshape(B, C, factor * H, factor * W)
    # bf16 output store + approx-reciprocal SiLU -> relaxed tolerance vs f32 ref.
    max_err = float(jnp.max(jnp.abs(out - ref)))
    assert jnp.allclose(out, ref, atol=5e-2, rtol=5e-2), max_err

    print("KERNEL_OK")
</pallas_src>

<mosaic_0001>
module attributes {stable_mosaic.version = 11 : i64} {
  func.func @_conv1x1_silu_kernel(%arg0: i32, %arg1: i32, %arg2: i32, %arg3: memref<1x4x256xf32, #tpu.memory_space<vmem>>, %arg4: memref<16x4xf32, #tpu.memory_space<vmem>>, %arg5: memref<16x1xf32, #tpu.memory_space<vmem>>, %arg6: memref<1x16x256xbf16, #tpu.memory_space<vmem>>) attributes {dimension_semantics = [#tpu.dimension_semantics<parallel>, #tpu.dimension_semantics<parallel>, #tpu.dimension_semantics<parallel>], iteration_bounds = array<i64: 2, 1, 1>, scalar_prefetch = 0 : i64, scratch_operands = 0 : i64, tpu.core_type = #tpu.core_type<tc>, window_params = [{transform_indices = @transform_0, window_bounds = array<i64: 1, 4, 256>}, {transform_indices = @transform_1, window_bounds = array<i64: 16, 4>}, {transform_indices = @transform_2, window_bounds = array<i64: 16, 1>}, {transform_indices = @transform_3, window_bounds = array<i64: 1, 16, 256>}]} {
    %c0 = arith.constant 0 : index
    %c0_0 = arith.constant 0 : index
    %c0_1 = arith.constant 0 : index
    %0 = vector.load %arg3[%c0, %c0_0, %c0_1] : memref<1x4x256xf32, #tpu.memory_space<vmem>>, vector<1x4x256xf32>
    %1 = vector.shape_cast %0 : vector<1x4x256xf32> to vector<4x256xf32>
    %c0_2 = arith.constant 0 : index
    %c0_3 = arith.constant 0 : index
    %2 = vector.load %arg4[%c0_2, %c0_3] : memref<16x4xf32, #tpu.memory_space<vmem>>, vector<16x4xf32>
    %cst = arith.constant dense<0.000000e+00> : vector<16x256xf32>
    %3 = tpu.matmul %2, %1, %cst {dimension_numbers = #tpu.dot_dimension_numbers<[1], [0], [0], [1], [0, 0, 1, 1], [], []>} : vector<16x4xf32>, vector<4x256xf32>, vector<16x256xf32> -> vector<16x256xf32>
    %c0_4 = arith.constant 0 : index
    %c0_5 = arith.constant 0 : index
    %4 = vector.load %arg5[%c0_4, %c0_5] : memref<16x1xf32, #tpu.memory_space<vmem>>, vector<16x1xf32>
    %5 = vector.broadcast %4 : vector<16x1xf32> to vector<16x256xf32>
    %6 = arith.addf %3, %5 : vector<16x256xf32>
    %cst_6 = arith.constant 0.000000e+00 : f32
    %7 = vector.broadcast %cst_6 : f32 to vector<16x256xf32>
    %8 = arith.subf %7, %6 : vector<16x256xf32>
    %9 = math.exp %8 : vector<16x256xf32>
    %cst_7 = arith.constant 1.000000e+00 : f32
    %10 = vector.broadcast %cst_7 : f32 to vector<16x256xf32>
    %11 = arith.addf %10, %9 : vector<16x256xf32>
    %12 = tpu.reciprocal %11 {approx = true} : vector<16x256xf32> -> vector<16x256xf32>
    %13 = arith.mulf %6, %12 : vector<16x256xf32>
    %14 = arith.truncf %13 : vector<16x256xf32> to vector<16x256xbf16>
    %c0_8 = arith.constant 0 : index
    %c0_9 = arith.constant 0 : index
    %c0_10 = arith.constant 0 : index
    %15 = vector.load %arg6[%c0_8, %c0_9, %c0_10] : memref<1x16x256xbf16, #tpu.memory_space<vmem>>, vector<1x16x256xbf16>
    %16 = vector.shape_cast %15 : vector<1x16x256xbf16> to vector<16x256xbf16>
    %17 = vector.shape_cast %14 : vector<16x256xbf16> to vector<1x16x256xbf16>
    tpu.vector_store %arg6[%c0_8, %c0_9, %c0_10], %17 {strides = array<i32>} : memref<1x16x256xbf16, #tpu.memory_space<vmem>>, vector<1x16x256xbf16>,
    return
  }
  func.func @transform_0(%arg0: i32, %arg1: i32, %arg2: i32) -> (i32, i32, i32) {
    %c0_i32 = arith.constant 0 : i32
    %c0_i32_0 = arith.constant 0 : i32
    return %arg0, %c0_i32, %arg2 : i32, i32, i32
  }
  func.func @transform_1(%arg0: i32, %arg1: i32, %arg2: i32) -> (i32, i32) {
    %c0_i32 = arith.constant 0 : i32
    %c0_i32_0 = arith.constant 0 : i32
    return %arg1, %c0_i32 : i32, i32
  }
  func.func @transform_2(%arg0: i32, %arg1: i32, %arg2: i32) -> (i32, i32) {
    %c0_i32 = arith.constant 0 : i32
    %c0_i32_0 = arith.constant 0 : i32
    return %arg1, %c0_i32 : i32, i32
  }
  func.func @transform_3(%arg0: i32, %arg1: i32, %arg2: i32) -> (i32, i32, i32) {
    %c0_i32 = arith.constant 0 : i32
    return %arg0, %arg1, %arg2 : i32, i32, i32
  }
}

</mosaic_0001>

<bundles_post_ra>
// kernel: upsample_forward.1
= control target key start
LH: loop header
LB: loop body
LE: loop exit
PB: predicated region body
PF: predicated region fallthrough
CT: control target
= control target key end

     0   :  { %s672_s12 = smov 0   ;;  %s674_s13 = smov 0   ;;  %s721_s0 = inlined_call_operand.vmem [shape: f32[2,4,256], index: 0, kind: input, shape index: {}]   ;;  %s722_s1 = inlined_call_operand.vmem [shape: f32[16,4], index: 1, kind: input, shape index: {}]   ;;  %s723_s2 = inlined_call_operand.vmem [shape: f32[16,1], index: 2, kind: input, shape index: {}]   ;;  %s724_s3 = inlined_call_operand.vmem [shape: bf16[2,16,256], index: 3, kind: output, shape index: {}]  }
   0x1   :  { %s676_s14 = smov 0  }
   0x2 LB: > { %s32_s15 = sadd.s32 1, %s644_s13  ;;  %p563_p0 = scmp.ge.s32.totalorder %s648_s14, 1  ;;  %s648_s14 = sphi %s676_s14, %s13_s14   ;;  %s644_s13 = sphi %s674_s13, %s726_s13   ;;  %s640_s12 = sphi %s672_s12, %s725_s12  }
   0x3   : > { %p34_p1 = scmp.ge.s32.totalorder %s32_s15, 2  ;;  %p189_p2 = scmp.lt.s32.totalorder %s648_s14, 3 }
   0x5   : > { %s728_s15 = smov (%p34_p1, %s32_s15), 0  ;;  %p190_p3 = pnand %p563_p0, %p189_p2 }
   0x6   : > { %p237_p4 = scmp.lt.s32.totalorder (!%p190_p3), %s640_s12, 1  ;;  %v650_v0 = vmov (!%p190_p3), 0.0   ;;  %v277_v1 = vld [vmem:[%s723_s2] sm:$0xff] (!%p190_p3)  ;;  %v651_v2 = vmov (!%p190_p3), 0   ;;  %v278_v3 = vld [vmem:[%s723_s2 + $0x8] sm:$0xff] (!%p190_p3)  ;;  %vm298_vm0 = vcmask (!%p190_p3), 1043456  }
   0x7   : > { %193 = sbr.rel (%p190_p3) target bundleno = 272 (0x110), region = 32  ;;  %367 = vmatprep.mubr.f32.mxu0 (!%p190_p3), %v650_v0  ;;  %373 = vmatprep.mubr.f32.mxu1 (!%p190_p3), %v650_v0  ;;  %v275_v6 = vld [vmem:[%s722_s1] sm:$0xff] (!%p190_p3)  ;;  %vm291_vm1 = vcmask (!%p190_p3), 31744   ;;  %v276_v7 = vld [vmem:[%s722_s1 + $0x8] sm:$0xff] (!%p190_p3) }
   0x8   : > { %608 = vset.pattern.permute.xlu0 (!%p190_p3), %v651_v2 }
   0x9   : > { %281 = vperm.xlu0 (!%p190_p3), %608, %v277_v1  }
   0xd   : > { %286 = vperm.xlu0 (!%p190_p3), %608, %v278_v3  }
   0xe   : > { %s730_s12 = smov (!%p237_p4, %s640_s12), 1 }
   0xf   : > { %s576_s18 = sshll.u32 %s730_s12, 3  ;;  %s577_s28 = sshll.u32 %s730_s12, 4 }
  0x10   : > { %s244_s23 = scalar_lea.vmem %s721_s0, %s576_s18  ;;  %s271_s4 = scalar_lea.vmem %s724_s3, %s577_s28 }
  0x11   : > { %v274_v4 = vld [vmem:[%s244_s23] sm:$0xff] }
  0x12   : > { %v290_v5 = vcombine.high %v274_v4, %v274_v4 }
  0x14   : > { %568 = vmatprep.subr.msk.mxu0 %vm298_vm0, %v290_v5  ;;  %580 = vmatprep.subr.msk.mxu1 %vm298_vm0, %v290_v5 }
  0x15   : > { %569 = vmatpush1.msk.msra.mxu0 %vm298_vm0, %v274_v4  ;;  %581 = vmatpush1.msk.msra.mxu1 %vm298_vm0, %v274_v4 }
  0x16   : > { %570 = vmatmul.mubr.msk.f32.vlgmr.msra.gmra.mrb[0].mxu0 %vm291_vm1, %v275_v6  ;;  %571 = vmatmul.mubr.msk.f32.vlgmr.msra.gmra.mrb[0].mxu1 %vm291_vm1, %v276_v7 }
  0x88   : > { %v282_v8 = vpop.permute.xlu0 %281 }
  0x8c   : > { %v287_v9 = vpop.permute.xlu0 %286 }
  0xe9   : > { %v369_v10 = vpop.f32.mrb[0].mxu0  ;;  %v375_v11 = vpop.f32.mrb[0].mxu1 }
  0xea   : > { %v370_v12 = vadd.f32 %v369_v10, %v282_v8  ;;  %v376_v13 = vadd.f32 %v375_v11, %v287_v9  ;;  %v371_v14 = vpop.f32.mrb[1].mxu0  ;;  %v377_v15 = vpop.f32.mrb[1].mxu1 }
  0xeb   : > { %v372_v16 = vadd.f32 %v371_v14, %v282_v8  ;;  %v378_v17 = vadd.f32 %v377_v15, %v287_v9 }
  0xec   : > { %v380_v18 = vsub.f32 0.0, %v370_v12  ;;  %v382_v19 = vsub.f32 0.0, %v376_v13 }
  0xed   : > { %v381_v20 = vsub.f32 0.0, %v372_v16  ;;  %v383_v21 = vsub.f32 0.0, %v378_v17 }
  0xee   : > { %v384_v22 = vmul.f32 1.442695, %v380_v18  ;;  %v388_v23 = vmul.f32 1.442695, %v382_v19 }
  0xef   : > { %v386_v24 = vmul.f32 1.442695, %v381_v20  ;;  %v390_v25 = vmul.f32 1.442695, %v383_v21 }
  0xf0   : > { %610 = vpow2.f32 %v384_v22 }
  0xf1   : > { %612 = vpow2.f32 %v388_v23 }
  0xf2   : > { %614 = vpow2.f32 %v386_v24 }
  0xf3   : > { %616 = vpow2.f32 %v390_v25 }
  0xfa   : > { %v611_v26 = vpop.eup %610 }
  0xfb   : > { %v613_v27 = vpop.eup %612  ;;  %v392_v28 = vadd.f32 1.0, %v611_v26 }
  0xfc   : > { %v615_v29 = vpop.eup %614  ;;  %v394_v30 = vadd.f32 1.0, %v613_v27 }
  0xfd   : > { %v617_v31 = vpop.eup %616  ;;  %618 = vrcp.f32 %v392_v28  ;;  %v393_v32 = vadd.f32 1.0, %v615_v29 }
  0xfe   : > { %620 = vrcp.f32 %v394_v30  ;;  %v395_v33 = vadd.f32 1.0, %v617_v31 }
  0xff   : > { %622 = vrcp.f32 %v393_v32 }
 0x100   : > { %624 = vrcp.f32 %v395_v33 }
 0x107   : > { %v619_v34 = vpop.eup %618 }
 0x108   : > { %v621_v35 = vpop.eup %620  ;;  %v400_v36 = vmul.f32 %v619_v34, %v370_v12 }
 0x109   : > { %v623_v37 = vpop.eup %622  ;;  %v402_v38 = vmul.f32 %v621_v35, %v376_v13 }
 0x10a   : > { %v625_v39 = vpop.eup %624  ;;  %v401_v40 = vmul.f32 %v623_v37, %v372_v16 }
 0x10b   : > { %v403_v41 = vmul.f32 %v625_v39, %v378_v17 }
 0x10c   : > { %v578_v42 = vpack.c.bf16 %v401_v40, %v400_v36 }
 0x10d   : > { %v579_v43 = vpack.c.bf16 %v403_v41, %v402_v38 }
 0x10e   : > { %416 = vst [vmem:[%s271_s4] sm:$0xff] %v578_v42 }
 0x10f   : > { %417 = vst [vmem:[%s271_s4 + $0x8] sm:$0xff] %v579_v43 }
 0x110 PF: > { %s13_s14 = sadd.s32 1, %s648_s14   ;;  %s725_s12 = smov %s644_s13 }
 0x111   : > { %p10_p5 = scmp.ge.s32.totalorder %s13_s14, 4   ;;  %s726_s13 = smov %s728_s15 }
 0x113   :  { %12 = sbr.rel (!%p10_p5) target bundleno = 2 (0x2), region = 68 }

</bundles_post_ra>
